<compile_context>
chip_gen: v7x
topology: tpu7x:2x2x1
jax: 0.10.0
libtpu: 0.0.40
codegen_flags: <defaults>
</compile_context>

<pallas_src>
import functools

import numpy as np
import jax
import jax.numpy as jnp
from jax import lax
from jax.experimental import pallas as pl
from jax.experimental.pallas import tpu as pltpu


# ----------------------------------------------------------------------------
# Pallas kernel: entire forward pass (single invocation, everything in VMEM)
# ----------------------------------------------------------------------------
def _model_kernel(wpi,            # static: wrong_per_input
                  gamma_ref,      # SMEM [1, 1] f32
                  x_ref,          # VMEM [Bt, D]     stacked [right; wrong]
                  wt_ref,         # VMEM [D, na]     thresh weight (transposed)
                  bt_ref,         # VMEM [1, na]     thresh bias
                  qaug_ref,       # VMEM [F+1, F+1]  main quad-form (lin folded)
                  out_ref):       # SMEM [3] f32 -> (rhosum, int_pen, neut_pen)
    gamma = gamma_ref[0, 0]
    x = x_ref[...]
    Bt, D = x.shape
    na = wt_ref.shape[1]
    F = D + na
    F1 = F + 1
    Br = Bt // (wpi + 1)          # Bt = Br + Br*wpi
    Bw = Bt - Br

    # --- thresh + tanh once over the stacked batch (right rows first) -------
    w = jnp.dot(x, wt_ref[...], preferred_element_type=jnp.float32) + bt_ref[...]
    t = jnp.tanh(gamma * w)                                          # [Bt, na]

    # interaction penalty sums over right AND wrong rows -> use full stack.
    int_pen = (gamma / 300.0) * jnp.sum((1.0 - t * t) ** 2)

    # --- b_aug = [x | t | 1] built with placement matmuls (no lane concat) --
    px = jnp.where(lax.broadcasted_iota(jnp.int32, (D, F1), 1)
                   == lax.broadcasted_iota(jnp.int32, (D, F1), 0), 1.0, 0.0)
    pt = jnp.where(lax.broadcasted_iota(jnp.int32, (na, F1), 1)
                   == lax.broadcasted_iota(jnp.int32, (na, F1), 0) + D, 1.0, 0.0)
    ones_col = jnp.where(lax.broadcasted_iota(jnp.int32, (1, F1), 1) == F,
                         1.0, 0.0)
    b_aug = (jnp.dot(x, px, preferred_element_type=jnp.float32)
             + jnp.dot(t, pt, preferred_element_type=jnp.float32)
             + ones_col)                                              # [Bt, F+1]

    # main(batch_vspin(b,2)) == wl.b + 0.5 b^T Q b == 0.5 b_aug^T Q_aug b_aug
    m = 0.5 * jnp.sum(jnp.dot(b_aug, qaug_ref[...],
                              preferred_element_type=jnp.float32) * b_aug,
                      axis=-1, keepdims=True)                         # [Bt, 1]

    # --- difference/expansion matrix: row i = e_{Br+i} - e_{i // wpi} -------
    r_idx = lax.broadcasted_iota(jnp.int32, (Bw, Bt), 0)
    c_idx = lax.broadcasted_iota(jnp.int32, (Bw, Bt), 1)
    pos = jnp.where(c_idx == r_idx + Br, 1.0, 0.0)
    lo = c_idx * wpi
    neg = jnp.where(jnp.logical_and(r_idx >= lo, r_idx < lo + wpi), 1.0, 0.0)
    mmat = pos - neg                                                  # [Bw, Bt]

    # m2 - m1_expanded   and   t2*w2 - repeat(t1*w1), each in one matmul.
    dm = jnp.dot(mmat, m, preferred_element_type=jnp.float32)         # [Bw, 1]
    rhosum = jnp.sum(jnp.maximum(1.0 - dm, 0.0))

    dtw = jnp.dot(mmat, t * w, preferred_element_type=jnp.float32)    # [Bw, na]
    neut_pen = jnp.sum(jnp.maximum(dtw, 0.0) ** 2)

    out_ref[0] = rhosum
    out_ref[1] = int_pen
    out_ref[2] = neut_pen


# ----------------------------------------------------------------------------
# One-time parameter preprocessing (hoisted out of the per-call hot path)
# ----------------------------------------------------------------------------
def prepare_params(thresh_w, thresh_b, main_w):
    """thresh_w: [na, D], thresh_b: [na], main_w: [1, V] with
    V = F + F*(F-1)/2, F = D + na (linear + i<j pairwise vspin features)."""
    tw = np.asarray(thresh_w, np.float32)
    tb = np.asarray(thresh_b, np.float32)
    mw = np.asarray(main_w, np.float32).reshape(-1)
    na, D = tw.shape
    F = D + na
    assert mw.shape[0] == F + F * (F - 1) // 2, "unexpected main weight size"

    wl = mw[:F]
    wq = mw[F:]
    iu, ju = np.triu_indices(F, k=1)
    q = np.zeros((F, F), np.float32)
    q[iu, ju] = wq
    q = q + q.T                               # symmetric, zero diagonal
    q_aug = np.zeros((F + 1, F + 1), np.float32)
    q_aug[:F, :F] = q
    q_aug[:F, F] = wl                         # fold linear term into Q_aug
    q_aug[F, :F] = wl

    return dict(
        wt_t=jnp.asarray(tw.T),               # [D, na]
        bt=jnp.asarray(tb.reshape(1, na)),    # [1, na]
        q_aug=jnp.asarray(q_aug),             # [F+1, F+1]
    )


# ----------------------------------------------------------------------------
# Per-call wrapper (jitted; gamma is a runtime value -> no retrace on change)
# ----------------------------------------------------------------------------
@functools.partial(jax.jit, static_argnums=(2,))
def model_forward(right, wrong, wrong_per_input, params, gamma):
    """right: [Br, D], wrong: [Br*wrong_per_input, D]."""
    right = right.astype(jnp.float32)
    wrong = wrong.astype(jnp.float32)
    x_all = jnp.concatenate([right, wrong], axis=0)          # [Br+Bw, D]
    gamma_arr = jnp.asarray(gamma, jnp.float32).reshape(1, 1)

    kernel = functools.partial(_model_kernel, wrong_per_input)
    out = pl.pallas_call(
        kernel,
        out_shape=jax.ShapeDtypeStruct((3,), jnp.float32),
        in_specs=[
            pl.BlockSpec(memory_space=pltpu.MemorySpace.SMEM),   # gamma
            pl.BlockSpec(memory_space=pltpu.MemorySpace.VMEM),   # x_all
            pl.BlockSpec(memory_space=pltpu.MemorySpace.VMEM),   # thresh W^T
            pl.BlockSpec(memory_space=pltpu.MemorySpace.VMEM),   # thresh b
            pl.BlockSpec(memory_space=pltpu.MemorySpace.VMEM),   # Q_aug
        ],
        out_specs=pl.BlockSpec(memory_space=pltpu.MemorySpace.SMEM),
    )(gamma_arr, x_all, params["wt_t"], params["bt"], params["q_aug"])
    return out[0], out[1], out[2]


# ----------------------------------------------------------------------------
# Pure-JAX reference (literal translation of the PyTorch forward)
# ----------------------------------------------------------------------------
def _batch_vspin_ref(b):
    Fdim = b.shape[-1]
    outer = b[:, :, None] * b[:, None, :]
    iu, ju = np.triu_indices(Fdim, k=1)
    return jnp.concatenate([b, outer[:, iu, ju]], axis=-1)


def _forward_ref(right, wrong, wpi, thresh_w, thresh_b, main_w, gamma=1.0):
    w1 = right @ thresh_w.T + thresh_b
    w2 = wrong @ thresh_w.T + thresh_b
    t1 = jnp.tanh(gamma * w1)
    t2 = jnp.tanh(gamma * w2)
    b1 = jnp.concatenate([right, t1], axis=-1)
    b2 = jnp.concatenate([wrong, t2], axis=-1)
    v1 = _batch_vspin_ref(b1)
    v2 = _batch_vspin_ref(b2)
    v1e = jnp.repeat(v1, wpi, axis=0)
    rte = jnp.repeat(t1 * w1, wpi, axis=0)
    rho = jnp.sum(jax.nn.relu((v1e - v2) @ main_w.T + 1.0))
    ip = gamma / 300.0 * (jnp.sum((1 - t1 ** 2) ** 2) + jnp.sum((1 - t2 ** 2) ** 2))
    npen = jnp.sum(jax.nn.relu(t2 * w2 - rte) ** 2)
    return rho, ip, npen


# ----------------------------------------------------------------------------
if __name__ == "__main__":
    key = jax.random.PRNGKey(0)
    Br, wpi, D, na = 4, 2, 6, 4            # right batch, wrongs-per-right, in-dim, na
    Bw = Br * wpi
    F = D + na
    V = F + F * (F - 1) // 2               # vspin feature count (linear + pairwise)

    k1, k2, k3, k4, k5 = jax.random.split(key, 5)
    right = jax.random.normal(k1, (Br, D), jnp.float32)
    wrong = jax.random.normal(k2, (Bw, D), jnp.float32)
    thresh_w = 0.3 * jax.random.normal(k3, (na, D), jnp.float32)   # LazyLinear(na) weight
    thresh_b = 0.1 * jax.random.normal(k4, (na,), jnp.float32)     # LazyLinear(na) bias
    main_w = 0.2 * jax.random.normal(k5, (1, V), jnp.float32)      # LazyLinear(1, bias=False)
    gamma = 1.0

    params = prepare_params(thresh_w, thresh_b, main_w)            # once, off hot path

    rho, ip, npen = model_forward(right, wrong, wpi, params, gamma)
    jax.block_until_ready((rho, ip, npen))

    rho_r, ip_r, npen_r = _forward_ref(right, wrong, wpi, thresh_w, thresh_b, main_w, gamma)
    np.testing.assert_allclose(np.array(rho), np.array(rho_r), rtol=2e-3, atol=2e-3)
    np.testing.assert_allclose(np.array(ip), np.array(ip_r), rtol=2e-3, atol=2e-3)
    np.testing.assert_allclose(np.array(npen), np.array(npen_r), rtol=2e-3, atol=2e-3)

    print("KERNEL_OK")
</pallas_src>

<mosaic_0001>
module attributes {stable_mosaic.version = 11 : i64} {
  func.func @_model_kernel(%arg0: memref<1x1xf32, #tpu.memory_space<smem>>, %arg1: memref<12x6xf32, #tpu.memory_space<vmem>>, %arg2: memref<6x4xf32, #tpu.memory_space<vmem>>, %arg3: memref<1x4xf32, #tpu.memory_space<vmem>>, %arg4: memref<11x11xf32, #tpu.memory_space<vmem>>, %arg5: memref<3xf32, #tpu.memory_space<smem>>) attributes {dimension_semantics = [], scalar_prefetch = 0 : i64, scratch_operands = 0 : i64, tpu.core_type = #tpu.core_type<tc>} {
    %c0 = arith.constant 0 : index
    %c0_0 = arith.constant 0 : index
    %0 = memref.load %arg0[%c0, %c0_0] : memref<1x1xf32, #tpu.memory_space<smem>>
    %c0_1 = arith.constant 0 : index
    %c0_2 = arith.constant 0 : index
    %1 = vector.load %arg1[%c0_1, %c0_2] : memref<12x6xf32, #tpu.memory_space<vmem>>, vector<12x6xf32>
    %c0_3 = arith.constant 0 : index
    %c0_4 = arith.constant 0 : index
    %2 = vector.load %arg2[%c0_3, %c0_4] : memref<6x4xf32, #tpu.memory_space<vmem>>, vector<6x4xf32>
    %cst = arith.constant dense<0.000000e+00> : vector<12x4xf32>
    %3 = tpu.matmul %1, %2, %cst {dimension_numbers = #tpu.dot_dimension_numbers<[1], [0], [0], [1], [0, 0, 1, 1], [], []>} : vector<12x6xf32>, vector<6x4xf32>, vector<12x4xf32> -> vector<12x4xf32>
    %c0_5 = arith.constant 0 : index
    %c0_6 = arith.constant 0 : index
    %4 = vector.load %arg3[%c0_5, %c0_6] : memref<1x4xf32, #tpu.memory_space<vmem>>, vector<1x4xf32>
    %5 = vector.broadcast %4 : vector<1x4xf32> to vector<12x4xf32>
    %6 = arith.addf %3, %5 : vector<12x4xf32>
    %7 = vector.broadcast %0 : f32 to vector<12x4xf32>
    %8 = arith.mulf %7, %6 : vector<12x4xf32>
    %9 = math.tanh %8 : vector<12x4xf32>
    %cst_7 = arith.constant 3.000000e+02 : f32
    %10 = arith.divf %0, %cst_7 : f32
    %11 = arith.mulf %9, %9 : vector<12x4xf32>
    %cst_8 = arith.constant 1.000000e+00 : f32
    %12 = vector.broadcast %cst_8 : f32 to vector<12x4xf32>
    %13 = arith.subf %12, %11 : vector<12x4xf32>
    %14 = arith.mulf %13, %13 : vector<12x4xf32>
    %15 = vector.shape_cast %14 : vector<12x4xf32> to vector<1x12x4xf32>
    %cst_9 = arith.constant dense<0.000000e+00> : vector<1xf32>
    %16 = vector.multi_reduction <add>, %15, %cst_9 [1, 2] : vector<1x12x4xf32> to vector<1xf32>
    %17 = vector.shape_cast %16 : vector<1xf32> to vector<1x1x1xf32>
    %18 = vector.extract %17[0, 0, 0] : f32 from vector<1x1x1xf32>
    %19 = arith.mulf %10, %18 : f32
    %20 = tpu.iota {dimensions = array<i32: 1>} : vector<6x11xi32>
    %21 = tpu.iota {dimensions = array<i32: 0>} : vector<6x11xi32>
    %22 = arith.cmpi eq, %20, %21 : vector<6x11xi32>
    %cst_10 = arith.constant 1.000000e+00 : f32
    %cst_11 = arith.constant 0.000000e+00 : f32
    %23 = vector.broadcast %cst_10 : f32 to vector<6x11xf32>
    %24 = vector.broadcast %cst_11 : f32 to vector<6x11xf32>
    %25 = arith.select %22, %23, %24 : vector<6x11xi1>, vector<6x11xf32>
    %26 = tpu.iota {dimensions = array<i32: 1>} : vector<4x11xi32>
    %27 = tpu.iota {dimensions = array<i32: 0>} : vector<4x11xi32>
    %c6_i32 = arith.constant 6 : i32
    %28 = vector.broadcast %c6_i32 : i32 to vector<4x11xi32>
    %29 = arith.addi %27, %28 : vector<4x11xi32>
    %30 = arith.cmpi eq, %26, %29 : vector<4x11xi32>
    %cst_12 = arith.constant 1.000000e+00 : f32
    %cst_13 = arith.constant 0.000000e+00 : f32
    %31 = vector.broadcast %cst_12 : f32 to vector<4x11xf32>
    %32 = vector.broadcast %cst_13 : f32 to vector<4x11xf32>
    %33 = arith.select %30, %31, %32 : vector<4x11xi1>, vector<4x11xf32>
    %34 = tpu.iota {dimensions = array<i32: 1>} : vector<1x11xi32>
    %c10_i32 = arith.constant 10 : i32
    %35 = vector.broadcast %c10_i32 : i32 to vector<1x11xi32>
    %36 = arith.cmpi eq, %34, %35 : vector<1x11xi32>
    %cst_14 = arith.constant 1.000000e+00 : f32
    %cst_15 = arith.constant 0.000000e+00 : f32
    %37 = vector.broadcast %cst_14 : f32 to vector<1x11xf32>
    %38 = vector.broadcast %cst_15 : f32 to vector<1x11xf32>
    %39 = arith.select %36, %37, %38 : vector<1x11xi1>, vector<1x11xf32>
    %cst_16 = arith.constant dense<0.000000e+00> : vector<12x11xf32>
    %40 = tpu.matmul %1, %25, %cst_16 {dimension_numbers = #tpu.dot_dimension_numbers<[1], [0], [0], [1], [0, 0, 1, 1], [], []>} : vector<12x6xf32>, vector<6x11xf32>, vector<12x11xf32> -> vector<12x11xf32>
    %cst_17 = arith.constant dense<0.000000e+00> : vector<12x11xf32>
    %41 = tpu.matmul %9, %33, %cst_17 {dimension_numbers = #tpu.dot_dimension_numbers<[1], [0], [0], [1], [0, 0, 1, 1], [], []>} : vector<12x4xf32>, vector<4x11xf32>, vector<12x11xf32> -> vector<12x11xf32>
    %42 = arith.addf %40, %41 : vector<12x11xf32>
    %43 = vector.broadcast %39 : vector<1x11xf32> to vector<12x11xf32>
    %44 = arith.addf %42, %43 : vector<12x11xf32>
    %c0_18 = arith.constant 0 : index
    %c0_19 = arith.constant 0 : index
    %45 = vector.load %arg4[%c0_18, %c0_19] : memref<11x11xf32, #tpu.memory_space<vmem>>, vector<11x11xf32>
    %cst_20 = arith.constant dense<0.000000e+00> : vector<12x11xf32>
    %46 = tpu.matmul %44, %45, %cst_20 {dimension_numbers = #tpu.dot_dimension_numbers<[1], [0], [0], [1], [0, 0, 1, 1], [], []>} : vector<12x11xf32>, vector<11x11xf32>, vector<12x11xf32> -> vector<12x11xf32>
    %47 = arith.mulf %46, %44 : vector<12x11xf32>
    %cst_21 = arith.constant dense<0.000000e+00> : vector<12xf32>
    %48 = vector.multi_reduction <add>, %47, %cst_21 [1] : vector<12x11xf32> to vector<12xf32>
    %49 = vector.shape_cast %48 : vector<12xf32> to vector<12x1xf32>
    %cst_22 = arith.constant 5.000000e-01 : f32
    %50 = vector.broadcast %cst_22 : f32 to vector<12x1xf32>
    %51 = arith.mulf %50, %49 : vector<12x1xf32>
    %52 = tpu.iota {dimensions = array<i32: 0>} : vector<8x12xi32>
    %53 = tpu.iota {dimensions = array<i32: 1>} : vector<8x12xi32>
    %c4_i32 = arith.constant 4 : i32
    %54 = vector.broadcast %c4_i32 : i32 to vector<8x12xi32>
    %55 = arith.addi %52, %54 : vector<8x12xi32>
    %56 = arith.cmpi eq, %53, %55 : vector<8x12xi32>
    %cst_23 = arith.constant 1.000000e+00 : f32
    %cst_24 = arith.constant 0.000000e+00 : f32
    %57 = vector.broadcast %cst_23 : f32 to vector<8x12xf32>
    %58 = vector.broadcast %cst_24 : f32 to vector<8x12xf32>
    %59 = arith.select %56, %57, %58 : vector<8x12xi1>, vector<8x12xf32>
    %c2_i32 = arith.constant 2 : i32
    %60 = vector.broadcast %c2_i32 : i32 to vector<8x12xi32>
    %61 = arith.muli %53, %60 : vector<8x12xi32>
    %62 = arith.cmpi sge, %52, %61 : vector<8x12xi32>
    %c2_i32_25 = arith.constant 2 : i32
    %63 = vector.broadcast %c2_i32_25 : i32 to vector<8x12xi32>
    %64 = arith.addi %61, %63 : vector<8x12xi32>
    %65 = arith.cmpi slt, %52, %64 : vector<8x12xi32>
    %66 = arith.andi %62, %65 : vector<8x12xi1>
    %cst_26 = arith.constant 1.000000e+00 : f32
    %cst_27 = arith.constant 0.000000e+00 : f32
    %67 = vector.broadcast %cst_26 : f32 to vector<8x12xf32>
    %68 = vector.broadcast %cst_27 : f32 to vector<8x12xf32>
    %69 = arith.select %66, %67, %68 : vector<8x12xi1>, vector<8x12xf32>
    %70 = arith.subf %59, %69 : vector<8x12xf32>
    %cst_28 = arith.constant dense<0.000000e+00> : vector<8x1xf32>
    %71 = tpu.matmul %70, %51, %cst_28 {dimension_numbers = #tpu.dot_dimension_numbers<[1], [0], [0], [1], [0, 0, 1, 1], [], []>} : vector<8x12xf32>, vector<12x1xf32>, vector<8x1xf32> -> vector<8x1xf32>
    %cst_29 = arith.constant 1.000000e+00 : f32
    %72 = vector.broadcast %cst_29 : f32 to vector<8x1xf32>
    %73 = arith.subf %72, %71 : vector<8x1xf32>
    %cst_30 = arith.constant 0.000000e+00 : f32
    %74 = vector.broadcast %cst_30 : f32 to vector<8x1xf32>
    %75 = arith.maximumf %73, %74 : vector<8x1xf32>
    %76 = vector.shape_cast %75 : vector<8x1xf32> to vector<1x8x1xf32>
    %cst_31 = arith.constant dense<0.000000e+00> : vector<1xf32>
    %77 = vector.multi_reduction <add>, %76, %cst_31 [1, 2] : vector<1x8x1xf32> to vector<1xf32>
    %78 = vector.shape_cast %77 : vector<1xf32> to vector<1x1x1xf32>
    %79 = vector.extract %78[0, 0, 0] : f32 from vector<1x1x1xf32>
    %80 = arith.mulf %9, %6 : vector<12x4xf32>
    %cst_32 = arith.constant dense<0.000000e+00> : vector<8x4xf32>
    %81 = tpu.matmul %70, %80, %cst_32 {dimension_numbers = #tpu.dot_dimension_numbers<[1], [0], [0], [1], [0, 0, 1, 1], [], []>} : vector<8x12xf32>, vector<12x4xf32>, vector<8x4xf32> -> vector<8x4xf32>
    %cst_33 = arith.constant 0.000000e+00 : f32
    %82 = vector.broadcast %cst_33 : f32 to vector<8x4xf32>
    %83 = arith.maximumf %81, %82 : vector<8x4xf32>
    %84 = arith.mulf %83, %83 : vector<8x4xf32>
    %85 = vector.shape_cast %84 : vector<8x4xf32> to vector<1x8x4xf32>
    %cst_34 = arith.constant dense<0.000000e+00> : vector<1xf32>
    %86 = vector.multi_reduction <add>, %85, %cst_34 [1, 2] : vector<1x8x4xf32> to vector<1xf32>
    %87 = vector.shape_cast %86 : vector<1xf32> to vector<1x1x1xf32>
    %88 = vector.extract %87[0, 0, 0] : f32 from vector<1x1x1xf32>
    %c0_35 = arith.constant 0 : index
    %89 = memref.load %arg5[%c0_35] : memref<3xf32, #tpu.memory_space<smem>>
    memref.store %79, %arg5[%c0_35] : memref<3xf32, #tpu.memory_space<smem>>
    %c1 = arith.constant 1 : index
    %90 = memref.load %arg5[%c1] : memref<3xf32, #tpu.memory_space<smem>>
    memref.store %19, %arg5[%c1] : memref<3xf32, #tpu.memory_space<smem>>
    %c2 = arith.constant 2 : index
    %91 = memref.load %arg5[%c2] : memref<3xf32, #tpu.memory_space<smem>>
    memref.store %88, %arg5[%c2] : memref<3xf32, #tpu.memory_space<smem>>
    return
  }
}

</mosaic_0001>

<bundles_post_ra>
// kernel: model_forward.1
= control target key start
LH: loop header
LB: loop body
LE: loop exit
PB: predicated region body
PF: predicated region fallthrough
CT: control target
= control target key end

     0   :  { %vm40_vm0 = vcmask 1045504   ;;  %vm33_vm1 = vcmask 48128   ;;  %s854_s0 = inlined_call_operand.<no memory space> [shape: f32[1,1], index: 0, kind: input, shape index: {}]   ;;  %s855_s1 = inlined_call_operand.vmem [shape: f32[12,6], index: 1, kind: input, shape index: {}]   ;;  %s856_s2 = inlined_call_operand.vmem [shape: f32[6,4], index: 2, kind: input, shape index: {}]   ;;  %s857_s3 = inlined_call_operand.vmem [shape: f32[1,4], index: 3, kind: input, shape index: {}]   ;;  %s858_s4 = inlined_call_operand.vmem [shape: f32[11,11], index: 4, kind: input, shape index: {}]   ;;  %s859_s5 = inlined_call_operand.vmem [shape: f32[3], index: 5, kind: output, shape index: {}]  }
   0x1   :  { %v25_v0 = vld [vmem:[%s856_s2] sm:$0x3f]  ;;  %v24_v2 = vld [vmem:[%s855_s1 + $0x8] sm:$0xf] }
   0x2   :  { %v23_v1 = vld [vmem:[%s855_s1] sm:$0xff]  ;;  %667 = vmatprep.subr.msk.mxu0 %vm40_vm0, %v25_v0 }
   0x3   :  { %669 = vmatprep.mubr.msk.f32.mxu0 %vm33_vm1, %v23_v1 }
   0x4   :  { %11 = vsyncpa [#allocation4], 0  ;;  %668 = vmatpush3.msk.msra.mxu0 %vm40_vm0, %v25_v0  ;;  %v148_v3 = vlaneseq  ;;  %v748_v7 = vmov 0.0   ;;  %vm165_vm3 = vcmask 1043456   ;;  %v631_v10 = vld [vmem:[%s857_s3] ss:$0 sm:$0xff]  ;;  %v119_v12 = vstv %s854_s0 }
   0x5   :  { %670 = vmatmul.mubr.msk.f32.vlgmr.msra.gmra.mrb[0].mxu0 %vm33_vm1, %v24_v2  ;;  %vm133_vm5 = vcmask 31744   ;;  %vm135_vm6 = vcmask 27648   ;;  %v749_v27 = vmov 0.0|0.0   ;;  %vm750_vm7 = vmmov 1   ;;  %v324_v34 = vld [vmem:[%s858_s4] sm:$0xff]  ;;  %s622_s9 = sshll.u32 %s859_s5, 4  ;;  %s623_s9 = int_to_ptr.vmem [resolvable:$true] %s622_s9 }
   0x6   :  { %v796_v4 = vshrl.u32 %v148_v3, 7  ;;  %v798_v5 = vand.u32 127, %v148_v3  ;;  %vm821_vm8 = vmpackc.low %vm165_vm3, %vm750_vm7  ;;  %v325_v35 = vld [vmem:[%s858_s4 + $0x8] sm:$0x7]  ;;  %vm333_vm9 = vcmask 1042432   ;;  %vm326_vm12 = vcmask 89088   ;;  %p739_p1 = scmp.lt.s32.totalorder %s623_s9, %s623_s9 }
   0x7   :  { %v703_v36 = vpack.c.bf16 %v325_v35, %v324_v34  ;;  %vm704_vm10 = vmpackc.low %vm333_vm9, %vm750_vm7  ;;  %s126_s6 = smul.f32 0.0033333334, %s854_s0  ;;  %vm417_vm13 = vcmask 84992   ;;  %s734_s12 = scalar_lea.vmem %s623_s9, 16 }
   0x8   :  { %v154_v6 = vadd.s32 6, %v796_v4  ;;  %vm152_vm4 = vcmp.eq.s32.totalorder %v798_v5, %v796_v4  ;;  %vm157_vm11 = vcmp.eq.s32.totalorder %v798_v5, 10  ;;  %v426_v55 = vmul.u32 2, %v798_v5  ;;  %p735_p0 = scmp.ne.s32.totalorder %s623_s9, %s734_s12  ;;  %p740_p2 = scmp.lt.s32.totalorder %s734_s12, %s734_s12 }
   0x9   :  { %v153_v9 = vsel %vm152_vm4, 1.0, %v748_v7  ;;  %705 = vmatprep.subr.msk.bf16.mxu0 %vm704_vm10, %v703_v36  ;;  %v158_v44 = vsel %vm157_vm11, 1.0, %v748_v7  ;;  %v423_v57 = vadd.s32 4, %v796_v4  ;;  %vm512_vm4 = vcmask 7168  }
   0xa   :  { %vm155_vm2 = vcmp.eq.s32.totalorder %v798_v5, %v154_v6  ;;  %708 = vmatpush3.bf16.msk.msra.mxu0 %vm704_vm10, %v703_v36  ;;  %v428_v56 = vadd.s32 2, %v426_v55  ;;  %vm427_vm14 = vcmp.ge.s32.totalorder %v796_v4, %v426_v55  ;;  %p741_p3 = por %p740_p2, %p739_p1 }
   0xb   :  { %v156_v8 = vsel %vm155_vm2, 1.0, %v748_v7  ;;  %709 = vmatprep.subr.bf16.mxu0 %v749_v27  ;;  %vm751_vm2 = vmmov 0  }
   0xc   :  { %672 = vmatprep.subr.msk.mxu1 %vm165_vm3, %v156_v8  ;;  %vm429_vm15 = vcmp.lt.s32.totalorder %v796_v4, %v428_v56  ;;  %p742_p4 = pnand %p741_p3, %p735_p0 }
   0xd   :  { %673 = vmatpush3.msk.msra.mxu1 %vm165_vm3, %v156_v8  ;;  %vm433_vm3 = vcmask 97280  }
   0xe   :  { %677 = vmatprep.subr.msk.mxu1 %vm40_vm0, %v153_v9 }
  0xd8   :  { %v671_v11 = vpop.f32.mrb[0].mxu0 }
  0xd9   :  { %v116_v13 = vadd.f32 %v671_v11, %v631_v10  ;;  %v110_v14 = vpop.f32.mrb[1].mxu0 }
  0xda   :  { %v111_v15 = vadd.f32 %v631_v10, %v110_v14 }
  0xdb   :  { %v121_v16 = vmul.f32 %v119_v12, %v116_v13 }
  0xdc   :  { %v120_v17 = vmul.f32 %v119_v12, %v111_v15 }
  0xdd   :  { %730 = vtanh.f32 %v121_v16 }
  0xde   :  { %732 = vtanh.f32 %v120_v17 }
  0xe7   :  { %v731_v18 = vpop.eup %730 }
  0xe8   :  { %v733_v19 = vpop.eup %732  ;;  %v524_v20 = vmul.f32 %v731_v18, %v116_v13  ;;  %v128_v21 = vmul.f32 %v731_v18, %v731_v18 }
  0xe9   :  { %v523_v22 = vmul.f32 %v733_v19, %v111_v15  ;;  %674 = vmatprep.mubr.msk.f32.mxu1 %vm133_vm5, %v733_v19  ;;  %v127_v23 = vmul.f32 %v733_v19, %v733_v19 }
  0xea   :  { %675 = vmatmul.mubr.msk.f32.vlgmr.msra.gmra.mrb[0].mxu1 %vm133_vm5, %v731_v18  ;;  %v130_v24 = vsub.f32 1.0, %v128_v21 }
  0xeb   :  { %v714_v25 = vpack.c.bf16 %v524_v20, %v523_v22  ;;  %678 = vmatpush3.msk.msra.mxu1 %vm40_vm0, %v153_v9  ;;  %679 = vmatprep.mubr.msk.f32.mxu1 %vm33_vm1, %v23_v1  ;;  %v129_v26 = vsub.f32 1.0, %v127_v23  ;;  %vm424_vm0 = vcmp.eq.s32.totalorder %v798_v5, %v423_v57 }
  0xec   :  { %713 = vmatprep.subr.bf16.mxu1 %v749_v27  ;;  %v132_v28 = vmul.f32 %v130_v24, %v130_v24  ;;  %v425_v58 = vsel %vm424_vm0, 1.0, %v748_v7 }
  0xed   :  { %v131_v29 = vmul.f32 %v129_v26, %v129_v26 }
  0xee   :  { %v136_v30 = vsel %vm135_vm6, %v132_v28, 0.0 }
  0xef   :  { %v134_v31 = vsel %vm133_vm5, %v131_v29, 0.0 }
  0xf0   :  { %v137_v33 = vadd.f32 %v136_v30, %v134_v31 }
  0xf2   :  { %680 = vmatmul.mubr.msk.f32.vlgmr.msra.gmra.mrb[0].mxu1 %vm33_vm1, %v24_v2  ;;  %138 = vadd.xlane.f32.xlu1 %v137_v33  ;;  %vm430_vm1 = vmand %vm427_vm14, %vm429_vm15 }
  0xf3   :  { %716 = vmatpush3.bf16.msk.msra.mxu1 %vm821_vm8, %v714_v25  ;;  %v431_v59 = vsel %vm430_vm1, 1.0, %v748_v7  ;;  %700 = vmatprep.mubr.msk.f32.mxu1 %vm751_vm2, %v748_v7 }
  0xf4   :  { %v432_v60 = vsub.f32 %v425_v58, %v431_v59 }
  0xf6   :  { %701 = vmatmul.mubr.msk.f32.vlgmr.msra.gmra.mrb[2].mxu1 %vm433_vm3, %v432_v60 }
 0x17f   :  { %v139_v37 = vpop.xlane.xlu1 %138 }
 0x180   :  { %v140_v38 = vrot.slane %v139_v37, 4 }
 0x182   :  { %v141_v39 = vadd.f32 %v140_v38, %v139_v37 }
 0x184   :  { %v142_v40 = vrot.slane %v141_v39, 2 }
 0x186   :  { %v143_v41 = vadd.f32 %v142_v40, %v141_v39 }
 0x188   :  { %v144_v42 = vrot.slane %v143_v41, 1 }
 0x18a   :  { %v145_v43 = vadd.f32 %v144_v42, %v143_v41 }
 0x18c   :  { %719 = vpush %v145_v43 }
 0x1bd   :  { %s720_s7 = spop %719 }
 0x1be   :  { %s147_s4 = smul.f32 %s720_s7, %s126_s6 }
 0x1c0   :  { %613 = sst [smem:[#allocation3 + $0x1]] %s147_s4 }
 0x1c5   :  { %v681_v45 = vpop.f32.mrb[0].mxu1 }
 0x1c6   :  { %v313_v46 = vpop.f32.mrb[1].mxu1  ;;  %v323_v48 = vadd.f32 %v681_v45, %v158_v44 }
 0x1c7   :  { %v322_v47 = vadd.f32 %v313_v46, %v158_v44 }
 0x1c9   :  { %686 = vmatprep.mubr.msk.f32.mxu0 %vm326_vm12, %v322_v47  ;;  %v594_v2 = vpop.f32.mrb[2].mxu1 }
 0x1ca   :  { %687 = vmatmul.mubr.msk.f32.vlgmr.msra.gmra.mrb[2].mxu0 %vm326_vm12, %v323_v48  ;;  %v598_v3 = vmax.f32 %v594_v2, 0.0  ;;  %v702_v4 = vpop.f32.mrb[3].mxu1 }
 0x1cb   :  { %693 = vmatprep.mubr.msk.f32.mxu0 %vm751_vm2, %v748_v7 }
 0x1cc   :  { %v599_v5 = vmul.f32 %v598_v3, %v598_v3 }
 0x1ce   :  { %v600_v6 = vsel %vm133_vm5, %v599_v5, 0.0 }
 0x29d   :  { %v688_v49 = vpop.f32.mrb[2].mxu0 }
 0x29e   :  { %v403_v50 = vpop.f32.mrb[3].mxu0  ;;  %v413_v52 = vmul.f32 %v688_v49, %v323_v48 }
 0x29f   :  { %v412_v51 = vmul.f32 %v403_v50, %v322_v47 }
 0x2a0   :  { %v418_v54 = vsel %vm417_vm13, %v413_v52, 0.0 }
 0x2a1   :  { %v414_v53 = vsel %vm326_vm12, %v412_v51, 0.0 }
 0x2a2   :  { %415 = vadd.xlane.f32.xlu0 %v414_v53 }
 0x2a6   :  { %419 = vadd.xlane.f32.xlu0 %v418_v54 }
 0x2aa   :  { %601 = vadd.xlane.f32.xlu0 %v600_v6 }
 0x32f   :  { %v416_v61 = vpop.xlane.xlu0 %415 }
 0x330   :  { %v421_v63 = vmul.f32 0.5, %v416_v61 }
 0x333   :  { %v420_v62 = vpop.xlane.xlu0 %419 }
 0x334   :  { %v422_v0 = vmul.f32 0.5, %v420_v62 }
 0x336   :  { %v710_v1 = vpack.c.bf16 %v422_v0, %v421_v63 }
 0x337   :  { %v602_v12 = vpop.xlane.xlu0 %601 }
 0x338   :  { %712 = vmatpush3.bf16.msk.msra.mxu0 %vm821_vm8, %v710_v1  ;;  %v603_v13 = vrot.slane %v602_v12, 4 }
 0x33a   :  { %v604_v14 = vadd.f32 %v603_v13, %v602_v12 }
 0x33b   :  { %694 = vmatmul.mubr.msk.f32.vlgmr.msra.gmra.mrb[4].mxu0 %vm433_vm3, %v432_v60 }
 0x33c   :  { %v605_v15 = vrot.slane %v604_v14, 2 }
 0x33e   :  { %v606_v19 = vadd.f32 %v605_v15, %v604_v14 }
 0x340   :  { %v607_v22 = vrot.slane %v606_v19, 1 }
 0x342   :  { %v608_v25 = vadd.f32 %v607_v22, %v606_v19 }
 0x40e   :  { %v506_v8 = vpop.f32.mrb[4].mxu0 }
 0x40f   :  { %v510_v9 = vsub.f32 1.0, %v506_v8  ;;  %v695_v7 = vpop.f32.mrb[5].mxu0 }
 0x411   :  { %v511_v10 = vmax.f32 %v510_v9, 0.0 }
 0x413   :  { %v513_v11 = vsel %vm512_vm4, %v511_v10, 0.0 }
 0x414   :  { %514 = vadd.xlane.f32.xlu1 %v513_v11 }
 0x4a1   :  { %v515_v16 = vpop.xlane.xlu1 %514 }
 0x4a2   :  { %v516_v17 = vrot.slane %v515_v16, 4 }
 0x4a4   :  { %v517_v18 = vadd.f32 %v516_v17, %v515_v16 }
 0x4a6   :  { %v518_v20 = vrot.slane %v517_v18, 2 }
 0x4a8   :  { %v519_v21 = vadd.f32 %v518_v20, %v517_v18 }
 0x4aa   :  { %v520_v23 = vrot.slane %v519_v21, 1 }
 0x4ac   :  { %v521_v24 = vadd.f32 %v520_v23, %v519_v21 }
 0x4ae   :  { %721 = vpush %v521_v24 }
 0x4af   :  { %723 = vpush %v608_v25 }
 0x4df   :  { %s722_s10 = spop %721 }
 0x4e0   :  { %611 = sst [smem:[#allocation3]] %s722_s10  ;;  %s724_s11 = spop %723 }
 0x4e1   :  { %615 = sst [smem:[#allocation3 + $0x2]] %s724_s11 }
 0x4e2   :  { %745 = shalt.err (!%p742_p4)
}
 0x4e3   :  { %s752_s13 = smov [#allocation3]  }
 0x4e4   :  { %625 = dma.smem_to_vmem %s752_s13, 16, %s623_s9, [#allocation4]  }
 0x4e5   :  { %746 = dma.done.wait [#allocation4], 16  }
 0x4e6   :  { %747 = vsyncadd [#allocation4], 4294967280 }
 0x4e7   :  { %629 = sfence }
 0x4e8   :  { %630 = vsyncpa [#allocation4], 1 }

</bundles_post_ra>
